<compile_context>
chip_gen: v7x
topology: tpu7x:2x2x1
jax: 0.10.0
libtpu: 0.0.40
codegen_flags: <defaults>
</compile_context>

<pallas_src>
import functools

import jax
import jax.numpy as jnp
from jax.experimental import pallas as pl
from jax.experimental.pallas import tpu as pltpu

F32_EPS = float(jnp.finfo(jnp.float32).eps)
QUANT_MIN = 0      # quint8 default
QUANT_MAX = 255    # quint8 default

_C_TILE_MAX = 2048  # lanes per block when C is large (multiple of 128)


def _chip_defaults():
    """Per-TPU-generation tiling knobs."""
    kind = ""
    try:
        kind = jax.devices()[0].device_kind.lower()
    except Exception:
        pass
    if "v7" in kind or "tpu7" in kind:
        # 2 TCs/chip, 3.2 TB/s HBM, 64 MiB VMEM/TC: bigger tiles + 2-way row split.
        return dict(tile_bytes=8 << 20, row_tile_max=2048,
                    vmem_limit=40 << 20, num_splits=2)
    if "v6" in kind:
        # 1 TC, 1.4 TB/s HBM, 128 MiB VMEM: 8 MiB tiles cut per-step overhead.
        return dict(tile_bytes=8 << 20, row_tile_max=2048,
                    vmem_limit=48 << 20, num_splits=1)
    if "v5" in kind:
        # v5e: ~0.8 TB/s HBM, 16 MiB scoped VMEM default -> keep 4 MiB tiles,
        # raise the scoped limit to 32 MiB.
        return dict(tile_bytes=4 << 20, row_tile_max=1024,
                    vmem_limit=32 << 20, num_splits=1)
    return dict(tile_bytes=4 << 20, row_tile_max=1024,
                vmem_limit=32 << 20, num_splits=1)


def _mask_fill_values(dtype):
    """Fill values for invalid (out-of-bounds) rows: +X for min, -X for max."""
    if jnp.issubdtype(dtype, jnp.floating):
        return jnp.array(jnp.inf, dtype), jnp.array(-jnp.inf, dtype)
    info = jnp.iinfo(dtype)
    return jnp.array(info.max, dtype), jnp.array(info.min, dtype)


# -----------------------------------------------------------------------------
# Kernel: per-column min/max over the batch axis (the observer "forward" path).
# grid = (row_super_block [parallel], C_blocks [parallel],
#         row_blocks_per_split [arbitrary, innermost reduction])
# Outputs are (num_splits, C): each super-block accumulates into its own row.
# -----------------------------------------------------------------------------
def _minmax_kernel(x_ref, min_ref, max_ref, *, row_tile, tail_rows):
    s = pl.program_id(0)          # row super-block (multi-TC split)
    i = pl.program_id(2)          # row-tile index within the split (reduction)

    x = x_ref[...]                # (row_tile, c_tile), native dtype

    def reduce_and_accumulate(x_min_src, x_max_src):
        cur_min = jnp.min(x_min_src, axis=0, keepdims=True).astype(jnp.float32)
        cur_max = jnp.max(x_max_src, axis=0, keepdims=True).astype(jnp.float32)

        @pl.when(i == 0)
        def _():
            min_ref[...] = cur_min
            max_ref[...] = cur_max

        @pl.when(i > 0)
        def _():
            min_ref[...] = jnp.minimum(min_ref[...], cur_min)
            max_ref[...] = jnp.maximum(max_ref[...], cur_max)

    if tail_rows == row_tile:
        # N divides evenly into row tiles: no masking anywhere (pure 2 ops/vreg).
        reduce_and_accumulate(x, x)
    else:
        # Only the single global last tile holds invalid rows; mask only there.
        is_tail = jnp.logical_and(s == pl.num_programs(0) - 1,
                                  i == pl.num_programs(2) - 1)

        @pl.when(jnp.logical_not(is_tail))
        def _():
            reduce_and_accumulate(x, x)

        @pl.when(is_tail)
        def _():
            # (row_tile, 1) mask; jnp.where broadcasts it along the lanes.
            valid = jax.lax.broadcasted_iota(
                jnp.int32, (row_tile, 1), 0) < tail_rows
            hi, lo = _mask_fill_values(x.dtype)
            reduce_and_accumulate(jnp.where(valid, x, hi),
                                  jnp.where(valid, x, lo))


def input_equalization_observer_forward(x, running_min=None, running_max=None,
                                        row_tile=None, c_tile=None,
                                        num_splits=None):
    """Observe x (N, C). Returns (x, new_min_vals, new_max_vals).

    running_min/running_max == None models the PyTorch 'empty tensor' initial
    state (first observation). new_min/new_max are float32 of shape (C,)."""
    if x.ndim != 2:
        raise ValueError("InputEqualizationObserver only supports Linear layers")
    x_orig = x
    N, C = x.shape
    defaults = _chip_defaults()

    itemsize = jnp.dtype(x.dtype).itemsize
    sub = {4: 8, 2: 16, 1: 32}.get(itemsize, 8)   # sublane packing per dtype width

    # ---- lane densification for small C -------------------------------------
    # If C < 128, every vreg would carry only C/128 valid lanes.  Fold k rows
    # into one lane-dense row: (N, C) -> (ceil(N/k), k*C) (row-major reshape, so
    # densified column j*C + c is original column c).  Pad N to a multiple of k
    # by replicating the last row (does not change per-column min/max).
    fold_k = 1
    if c_tile is None and C < 128:
        fold_k = max(1, 128 // C)
    if fold_k > 1:
        pad = (-N) % fold_k
        if pad:
            x = jnp.concatenate([x, jnp.broadcast_to(x[-1:], (pad, C))], axis=0)
        x = x.reshape((N + pad) // fold_k, fold_k * C)
    N_eff, C_eff = x.shape

    # ---- lane tile -----------------------------------------------------------
    if c_tile is None:
        c_tile = C_eff if C_eff <= _C_TILE_MAX else _C_TILE_MAX
    else:
        c_tile = int(c_tile)
        if c_tile != C_eff and c_tile % 128 != 0:
            raise ValueError("c_tile must be a multiple of 128 or equal to C")
        c_tile = min(c_tile, C_eff)
    c_blocks = pl.cdiv(C_eff, c_tile)
    # NOTE: if C_eff % c_tile != 0, the last lane block reads OOB-padded columns;
    # harmless because each output column depends only on its own input column
    # and OOB output lanes are masked on writeback.

    # ---- row (reduction) tile ------------------------------------------------
    # Largest multiple of `sub` such that one input buffer <= tile_bytes
    # (Pallas double-buffers it), capped per generation and at ~N.
    n_round = max(sub, -(-N_eff // sub) * sub)
    if row_tile is None:
        rows_fit = max(
            sub, (defaults["tile_bytes"] // (c_tile * itemsize)) // sub * sub)
        row_tile = min(defaults["row_tile_max"], rows_fit, n_round)
    row_tile = max(sub, (int(row_tile) // sub) * sub)
    row_tile = min(row_tile, n_round)
    row_blocks = pl.cdiv(N_eff, row_tile)

    # ---- multi-TC row split (v7x) --------------------------------------------
    if num_splits is None:
        num_splits = defaults["num_splits"] if c_blocks == 1 else 1
    num_splits = max(1, int(num_splits))
    if N_eff <= sub:
        num_splits = 1
    if num_splits > 1 and row_blocks % num_splits != 0:
        # Re-tile so the row-block count divides evenly, keeping the only
        # partial tile at the global end (static tail handling).
        target_rb = -(-row_blocks // num_splits) * num_splits
        base = -(-N_eff // target_rb)                 # ceil(N_eff / target_rb)
        cand = max(sub, -(-base // sub) * sub)        # round up to sublane multiple
        if pl.cdiv(N_eff, cand) % num_splits == 0:
            row_tile = cand
            row_blocks = pl.cdiv(N_eff, cand)
        else:
            num_splits = 1
    blocks_per_split = row_blocks // num_splits
    tail_rows = N_eff - (row_blocks - 1) * row_tile   # valid rows in last block

    grid = (num_splits, c_blocks, blocks_per_split)

    kernel = functools.partial(_minmax_kernel, row_tile=row_tile,
                               tail_rows=tail_rows)

    part_min, part_max = pl.pallas_call(
        kernel,
        out_shape=(jax.ShapeDtypeStruct((num_splits, C_eff), jnp.float32),
                   jax.ShapeDtypeStruct((num_splits, C_eff), jnp.float32)),
        grid_spec=pltpu.PrefetchScalarGridSpec(
            num_scalar_prefetch=0,
            grid=grid,
            in_specs=[pl.BlockSpec(
                (row_tile, c_tile),
                lambda s, j, i: (s * blocks_per_split + i, j))],
            out_specs=[pl.BlockSpec((1, c_tile), lambda s, j, i: (s, j)),
                       pl.BlockSpec((1, c_tile), lambda s, j, i: (s, j))],
        ),
        compiler_params=pltpu.CompilerParams(
            dimension_semantics=("parallel", "parallel", "arbitrary"),
            vmem_limit_bytes=defaults["vmem_limit"]),
    )(x)

    # Fold the per-split partials, undo lane densification, then fold the
    # running state -- all tiny (C,)-sized jnp ops.
    new_min = jnp.min(part_min, axis=0)
    new_max = jnp.max(part_max, axis=0)
    if fold_k > 1:
        new_min = jnp.min(new_min.reshape(fold_k, C), axis=0)
        new_max = jnp.max(new_max.reshape(fold_k, C), axis=0)

    if running_min is not None:
        new_min = jnp.minimum(new_min, running_min.astype(jnp.float32))
    if running_max is not None:
        new_max = jnp.maximum(new_max, running_max.astype(jnp.float32))

    # forward returns x_orig unchanged (observer is a pass-through)
    return x_orig, new_min, new_max


# -----------------------------------------------------------------------------
# calculate_qparams: scale min/max columns by the equalization scale, reduce to
# global min/max, then per-tensor-affine qparams.  Plain jnp on purpose: it is
# a (C,)-sized multiply + two reductions + scalar math, and a dedicated
# pallas_call would be dominated by launch / tiny-DMA overhead.
# -----------------------------------------------------------------------------
def calculate_qparams(min_vals, max_vals, equalization_scale,
                      quant_min=QUANT_MIN, quant_max=QUANT_MAX):
    min_vals = min_vals.astype(jnp.float32)
    max_vals = max_vals.astype(jnp.float32)
    eq = equalization_scale.astype(jnp.float32)

    min_scaled = jnp.min(min_vals * eq)
    max_scaled = jnp.max(max_vals * eq)

    min_neg = jnp.minimum(min_scaled, 0.0)
    max_pos = jnp.maximum(max_scaled, 0.0)
    scale = (max_pos - min_neg) / jnp.float32(quant_max - quant_min)
    scale = jnp.maximum(scale, jnp.float32(F32_EPS))
    zp = jnp.float32(quant_min) - jnp.round(min_neg / scale)   # round before clip
    zp = jnp.clip(zp, quant_min, quant_max).astype(jnp.int32)

    # Degenerate / unobserved state -> default qparams (matches check_min_max_valid)
    valid = min_scaled <= max_scaled
    scale = jnp.where(valid, scale, jnp.float32(1.0))
    zp = jnp.where(valid, zp, jnp.int32(0))
    return scale, zp


if __name__ == "__main__":
    key = jax.random.PRNGKey(0)
    k_x, k_x2, k_x3, k_eq = jax.random.split(key, 4)

    # ---- Observation 1: small Linear input (batch=16, in_features=32).
    # C < 128 -> exercises the lane-densification path.
    N, C = 16, 32
    x = jax.random.normal(k_x, (N, C), dtype=jnp.float32)
    y, min_vals, max_vals = input_equalization_observer_forward(x)
    y, min_vals, max_vals = jax.block_until_ready((y, min_vals, max_vals))

    # ---- Observation 2: batch NOT divisible by the row tile -> running
    # min/max update + the (tail-only) row-masking path.
    N2 = 40
    x2 = jax.random.normal(k_x2, (N2, C), dtype=jnp.float32) * 2.0
    _, min_vals, max_vals = input_equalization_observer_forward(
        x2, running_min=min_vals, running_max=max_vals, row_tile=16)
    min_vals, max_vals = jax.block_until_ready((min_vals, max_vals))

    # ---- Observation 3: larger input exercising the 2-way row super-block
    # split (v7x path, runs serially elsewhere), multi-step accumulation and a
    # tail tile (250 % 64 != 0).
    N3, C3 = 250, 256
    x3 = jax.random.normal(k_x3, (N3, C3), dtype=jnp.float32)
    _, min3, max3 = input_equalization_observer_forward(
        x3, row_tile=64, num_splits=2)
    min3, max3 = jax.block_until_ready((min3, max3))

    # ---- qparams from observations 1+2 (equalization scale normally set via
    # set_equalization_scale).
    equalization_scale = 0.5 + jax.random.uniform(k_eq, (C,), dtype=jnp.float32)
    scale_in, zp_in = calculate_qparams(min_vals, max_vals, equalization_scale)
    scale_in, zp_in = jax.block_until_ready((scale_in, zp_in))

    # ---------------- reference checks in plain JAX ----------------
    ref_min = jnp.minimum(jnp.min(x, axis=0), jnp.min(x2, axis=0))
    ref_max = jnp.maximum(jnp.max(x, axis=0), jnp.max(x2, axis=0))
    assert jnp.array_equal(y, x), "forward must return input unchanged"
    assert jnp.allclose(min_vals, ref_min), "min mismatch"
    assert jnp.allclose(max_vals, ref_max), "max mismatch"
    assert jnp.allclose(min3, jnp.min(x3, axis=0)), "split-path min mismatch"
    assert jnp.allclose(max3, jnp.max(x3, axis=0)), "split-path max mismatch"

    r_min = jnp.minimum(jnp.min(ref_min * equalization_scale), 0.0)
    r_max = jnp.maximum(jnp.max(ref_max * equalization_scale), 0.0)
    r_scale = jnp.maximum((r_max - r_min) / (QUANT_MAX - QUANT_MIN), F32_EPS)
    r_zp = jnp.clip(QUANT_MIN - jnp.round(r_min / r_scale), QUANT_MIN, QUANT_MAX)
    assert jnp.allclose(scale_in, r_scale, rtol=1e-6), "scale mismatch"
    assert int(zp_in) == int(r_zp), "zero_point mismatch"

    print("KERNEL_OK")
</pallas_src>

<mosaic_0001>
module attributes {stable_mosaic.version = 11 : i64} {
  func.func @_minmax_kernel(%arg0: i32, %arg1: i32, %arg2: i32, %arg3: memref<8x128xf32, #tpu.memory_space<vmem>>, %arg4: memref<1x128xf32, #tpu.memory_space<vmem>>, %arg5: memref<1x128xf32, #tpu.memory_space<vmem>>) attributes {dimension_semantics = [#tpu.dimension_semantics<parallel>, #tpu.dimension_semantics<parallel>, #tpu.dimension_semantics<arbitrary>], iteration_bounds = array<i64: 1, 1, 1>, scalar_prefetch = 0 : i64, scratch_operands = 0 : i64, tpu.core_type = #tpu.core_type<tc>, window_params = [{transform_indices = @transform_0, window_bounds = array<i64: 8, 128>}, {transform_indices = @transform_1, window_bounds = array<i64: 1, 128>}, {transform_indices = @transform_2, window_bounds = array<i64: 1, 128>}]} {
    %c0 = arith.constant 0 : index
    %c0_0 = arith.constant 0 : index
    %0 = vector.load %arg3[%c0, %c0_0] : memref<8x128xf32, #tpu.memory_space<vmem>>, vector<8x128xf32>
    %c0_i32 = arith.constant 0 : i32
    %1 = arith.cmpi eq, %arg0, %c0_i32 : i32
    %c0_i32_1 = arith.constant 0 : i32
    %2 = arith.cmpi eq, %arg2, %c0_i32_1 : i32
    %3 = arith.andi %1, %2 : i1
    %true = arith.constant true
    %4 = arith.xori %3, %true : i1
    %5 = arith.extui %4 : i1 to i32
    %c0_i32_2 = arith.constant 0 : i32
    %6 = arith.cmpi ne, %5, %c0_i32_2 : i32
    scf.if %6 {
      %cst = arith.constant dense<0x7F800000> : vector<128xf32>
      %9 = vector.multi_reduction <minimumf>, %0, %cst [0] : vector<8x128xf32> to vector<128xf32>
      %10 = vector.shape_cast %9 : vector<128xf32> to vector<1x128xf32>
      %cst_4 = arith.constant dense<0xFF800000> : vector<128xf32>
      %11 = vector.multi_reduction <maximumf>, %0, %cst_4 [0] : vector<8x128xf32> to vector<128xf32>
      %12 = vector.shape_cast %11 : vector<128xf32> to vector<1x128xf32>
      %c0_i32_5 = arith.constant 0 : i32
      %13 = arith.cmpi eq, %arg2, %c0_i32_5 : i32
      %14 = arith.extui %13 : i1 to i32
      %c0_i32_6 = arith.constant 0 : i32
      %15 = arith.cmpi ne, %14, %c0_i32_6 : i32
      scf.if %15 {
        %c0_9 = arith.constant 0 : index
        %c0_10 = arith.constant 0 : index
        %19 = vector.load %arg4[%c0_9, %c0_10] : memref<1x128xf32, #tpu.memory_space<vmem>>, vector<1x128xf32>
        tpu.vector_store %arg4[%c0_9, %c0_10], %10 {strides = array<i32>} : memref<1x128xf32, #tpu.memory_space<vmem>>, vector<1x128xf32>,
        %c0_11 = arith.constant 0 : index
        %c0_12 = arith.constant 0 : index
        %20 = vector.load %arg5[%c0_11, %c0_12] : memref<1x128xf32, #tpu.memory_space<vmem>>, vector<1x128xf32>
        tpu.vector_store %arg5[%c0_11, %c0_12], %12 {strides = array<i32>} : memref<1x128xf32, #tpu.memory_space<vmem>>, vector<1x128xf32>,
      } else {
      }
      %c0_i32_7 = arith.constant 0 : i32
      %16 = arith.cmpi sgt, %arg2, %c0_i32_7 : i32
      %17 = arith.extui %16 : i1 to i32
      %c0_i32_8 = arith.constant 0 : i32
      %18 = arith.cmpi ne, %17, %c0_i32_8 : i32
      scf.if %18 {
        %c0_9 = arith.constant 0 : index
        %c0_10 = arith.constant 0 : index
        %19 = vector.load %arg4[%c0_9, %c0_10] : memref<1x128xf32, #tpu.memory_space<vmem>>, vector<1x128xf32>
        %20 = arith.minimumf %19, %10 : vector<1x128xf32>
        %c0_11 = arith.constant 0 : index
        %c0_12 = arith.constant 0 : index
        %21 = vector.load %arg4[%c0_11, %c0_12] : memref<1x128xf32, #tpu.memory_space<vmem>>, vector<1x128xf32>
        tpu.vector_store %arg4[%c0_11, %c0_12], %20 {strides = array<i32>} : memref<1x128xf32, #tpu.memory_space<vmem>>, vector<1x128xf32>,
        %c0_13 = arith.constant 0 : index
        %c0_14 = arith.constant 0 : index
        %22 = vector.load %arg5[%c0_13, %c0_14] : memref<1x128xf32, #tpu.memory_space<vmem>>, vector<1x128xf32>
        %23 = arith.maximumf %22, %12 : vector<1x128xf32>
        %c0_15 = arith.constant 0 : index
        %c0_16 = arith.constant 0 : index
        %24 = vector.load %arg5[%c0_15, %c0_16] : memref<1x128xf32, #tpu.memory_space<vmem>>, vector<1x128xf32>
        tpu.vector_store %arg5[%c0_15, %c0_16], %23 {strides = array<i32>} : memref<1x128xf32, #tpu.memory_space<vmem>>, vector<1x128xf32>,
      } else {
      }
    } else {
    }
    %7 = arith.extui %3 : i1 to i32
    %c0_i32_3 = arith.constant 0 : i32
    %8 = arith.cmpi ne, %7, %c0_i32_3 : i32
    scf.if %8 {
      %9 = tpu.iota {dimensions = array<i32: 0>} : vector<8x1xi32>
      %c4_i32 = arith.constant 4 : i32
      %10 = vector.broadcast %c4_i32 : i32 to vector<8x1xi32>
      %11 = arith.cmpi slt, %9, %10 : vector<8x1xi32>
      %cst = arith.constant 0x7F800000 : f32
      %12 = vector.shape_cast %11 : vector<8x1xi1> to vector<8x1xi1>
      %13 = vector.broadcast %12 : vector<8x1xi1> to vector<8x128xi1>
      %14 = vector.broadcast %cst : f32 to vector<8x128xf32>
      %15 = arith.select %13, %0, %14 : vector<8x128xi1>, vector<8x128xf32>
      %cst_4 = arith.constant 0xFF800000 : f32
      %16 = vector.shape_cast %11 : vector<8x1xi1> to vector<8x1xi1>
      %17 = vector.broadcast %16 : vector<8x1xi1> to vector<8x128xi1>
      %18 = vector.broadcast %cst_4 : f32 to vector<8x128xf32>
      %19 = arith.select %17, %0, %18 : vector<8x128xi1>, vector<8x128xf32>
      %cst_5 = arith.constant dense<0x7F800000> : vector<128xf32>
      %20 = vector.multi_reduction <minimumf>, %15, %cst_5 [0] : vector<8x128xf32> to vector<128xf32>
      %21 = vector.shape_cast %20 : vector<128xf32> to vector<1x128xf32>
      %cst_6 = arith.constant dense<0xFF800000> : vector<128xf32>
      %22 = vector.multi_reduction <maximumf>, %19, %cst_6 [0] : vector<8x128xf32> to vector<128xf32>
      %23 = vector.shape_cast %22 : vector<128xf32> to vector<1x128xf32>
      %c0_i32_7 = arith.constant 0 : i32
      %24 = arith.cmpi eq, %arg2, %c0_i32_7 : i32
      %25 = arith.extui %24 : i1 to i32
      %c0_i32_8 = arith.constant 0 : i32
      %26 = arith.cmpi ne, %25, %c0_i32_8 : i32
      scf.if %26 {
        %c0_11 = arith.constant 0 : index
        %c0_12 = arith.constant 0 : index
        %30 = vector.load %arg4[%c0_11, %c0_12] : memref<1x128xf32, #tpu.memory_space<vmem>>, vector<1x128xf32>
        tpu.vector_store %arg4[%c0_11, %c0_12], %21 {strides = array<i32>} : memref<1x128xf32, #tpu.memory_space<vmem>>, vector<1x128xf32>,
        %c0_13 = arith.constant 0 : index
        %c0_14 = arith.constant 0 : index
        %31 = vector.load %arg5[%c0_13, %c0_14] : memref<1x128xf32, #tpu.memory_space<vmem>>, vector<1x128xf32>
        tpu.vector_store %arg5[%c0_13, %c0_14], %23 {strides = array<i32>} : memref<1x128xf32, #tpu.memory_space<vmem>>, vector<1x128xf32>,
      } else {
      }
      %c0_i32_9 = arith.constant 0 : i32
      %27 = arith.cmpi sgt, %arg2, %c0_i32_9 : i32
      %28 = arith.extui %27 : i1 to i32
      %c0_i32_10 = arith.constant 0 : i32
      %29 = arith.cmpi ne, %28, %c0_i32_10 : i32
      scf.if %29 {
        %c0_11 = arith.constant 0 : index
        %c0_12 = arith.constant 0 : index
        %30 = vector.load %arg4[%c0_11, %c0_12] : memref<1x128xf32, #tpu.memory_space<vmem>>, vector<1x128xf32>
        %31 = arith.minimumf %30, %21 : vector<1x128xf32>
        %c0_13 = arith.constant 0 : index
        %c0_14 = arith.constant 0 : index
        %32 = vector.load %arg4[%c0_13, %c0_14] : memref<1x128xf32, #tpu.memory_space<vmem>>, vector<1x128xf32>
        tpu.vector_store %arg4[%c0_13, %c0_14], %31 {strides = array<i32>} : memref<1x128xf32, #tpu.memory_space<vmem>>, vector<1x128xf32>,
        %c0_15 = arith.constant 0 : index
        %c0_16 = arith.constant 0 : index
        %33 = vector.load %arg5[%c0_15, %c0_16] : memref<1x128xf32, #tpu.memory_space<vmem>>, vector<1x128xf32>
        %34 = arith.maximumf %33, %23 : vector<1x128xf32>
        %c0_17 = arith.constant 0 : index
        %c0_18 = arith.constant 0 : index
        %35 = vector.load %arg5[%c0_17, %c0_18] : memref<1x128xf32, #tpu.memory_space<vmem>>, vector<1x128xf32>
        tpu.vector_store %arg5[%c0_17, %c0_18], %34 {strides = array<i32>} : memref<1x128xf32, #tpu.memory_space<vmem>>, vector<1x128xf32>,
      } else {
      }
    } else {
    }
    return
  }
  func.func @transform_0(%arg0: i32, %arg1: i32, %arg2: i32) -> (i32, i32) {
    %c1_i32 = arith.constant 1 : i32
    %0 = arith.muli %arg0, %c1_i32 : i32
    %1 = arith.addi %0, %arg2 : i32
    %c0_i32 = arith.constant 0 : i32
    return %1, %arg1 : i32, i32
  }
  func.func @transform_1(%arg0: i32, %arg1: i32, %arg2: i32) -> (i32, i32) {
    %c0_i32 = arith.constant 0 : i32
    return %arg0, %arg1 : i32, i32
  }
  func.func @transform_2(%arg0: i32, %arg1: i32, %arg2: i32) -> (i32, i32) {
    %c0_i32 = arith.constant 0 : i32
    return %arg0, %arg1 : i32, i32
  }
}

</mosaic_0001>

<bundles_post_ra>
// kernel: tpu_custom_call.1
= control target key start
LH: loop header
LB: loop body
LE: loop exit
PB: predicated region body
PF: predicated region fallthrough
CT: control target
= control target key end

     0   :  { %8 = vsyncpa [#allocation3], 0  ;;  %s279_s0 = inlined_call_operand.hbm [shape: f32[4,128], index: 0, kind: input, shape index: {}]   ;;  %s280_s1 = inlined_call_operand.hbm [shape: f32[1,128], index: 1, kind: output, shape index: {0}]   ;;  %s281_s2 = inlined_call_operand.hbm [shape: f32[1,128], index: 2, kind: output, shape index: {1}]  }
   0x1   :  { %9 = vsyncpa [#allocation4], 0 }
   0x2   :  { %10 = vsyncpa [#allocation7], 0 }
   0x3   :  { %19 = vsyncadd [#allocation3], 64  ;;  %s215_s9 = smov [#allocation2]   ;;  %s143_s13 = scalar_lea.hbm %s279_s0, 64 }
   0x4   :  { %s24_s10 = sshll.u32 %s215_s9, 4  ;;  %p144_p0 = scmp.ne.s32.totalorder %s279_s0, %s143_s13  ;;  %s25_s10 = int_to_ptr.vmem [resolvable:$true] %s24_s10 }
   0x5   :  { %p147_p1 = scmp.lt.u32.totalorder %s143_s13, %s279_s0 }
   0x7   :  { %p149_p2 = pnand %p147_p1, %p144_p0 }
   0x9   :  { %152 = shalt.err (!%p149_p2)
}
   0xa   :  { %s153_s18 = scalar_lea.vmem %s25_s10, 64  ;;  %s157_s19 = scalar_lea.vmem %s25_s10, 128 }
   0xb   :  { %p154_p3 = scmp.ne.s32.totalorder %s25_s10, %s153_s18  ;;  %p158_p4 = scmp.lt.s32.totalorder %s25_s10, %s25_s10 }
   0xc   :  { %p159_p5 = scmp.lt.s32.totalorder %s157_s19, %s153_s18 }
   0xe   :  { %p160_p6 = por %p159_p5, %p158_p4 }
  0x10   :  { %p161_p7 = pnand %p160_p6, %p154_p3 }
  0x12   :  { %164 = shalt.err (!%p161_p7)
}
  0x13   :  { %s216_s20 = smov 64   ;;  %s217_s21 = smov 4  }
  0x14   :  { %30 = dma.hbm_to_vmem [thread:$0]  %s279_s0, 64, %s25_s10, [#allocation3], %s216_s20, %s216_s20, %s217_s21  }
  0x15   :  { %209 = dma.done.wait [#allocation3], 128  }
  0x16   :  { %210 = vsyncadd [#allocation3], 4294967168  ;;  %v45_v0 = vlaneseq  ;;  %v38_v2 = vld [vmem:[#allocation2] sm:$0xff]  ;;  %s218_s24 = smov [#allocation5]   ;;  %s219_s0 = smov [#allocation6]  }
  0x17   :  { %s115_s25 = sshll.u32 %s218_s24, 4  ;;  %s125_s26 = sshll.u32 %s219_s0, 4  ;;  %s116_s25 = int_to_ptr.vmem [resolvable:$true] %s115_s25  ;;  %s247_s26 = int_to_ptr.vmem [resolvable:$true] %s125_s26 }
  0x18   :  { %v46_v1 = vshrl.u32 %v45_v0, 7  ;;  %s165_s27 = scalar_lea.vmem %s116_s25, 16  ;;  %s169_s28 = scalar_lea.vmem %s116_s25, 32 }
  0x19   :  { %p166_p8 = scmp.ne.s32.totalorder %s116_s25, %s165_s27  ;;  %p170_p9 = scmp.lt.s32.totalorder %s116_s25, %s116_s25 }
  0x1a   :  { %vm47_vm0 = vcmp.lt.s32.totalorder %v46_v1, 4  ;;  %p171_p10 = scmp.lt.s32.totalorder %s169_s28, %s165_s27 }
  0x1b   :  { %v50_v3 = vsel %vm47_vm0, %v38_v2, inf  ;;  %v51_v4 = vsel %vm47_vm0, %v38_v2, -inf }
  0x1c   :  { %v52_v5 = vrot.slane %v50_v3, 4  ;;  %v58_v6 = vrot.slane %v51_v4, 4  ;;  %p172_p11 = por %p171_p10, %p170_p9 }
  0x1e   :  { %v53_v7 = vmin.f32 %v50_v3, %v52_v5  ;;  %v59_v8 = vmax.f32 %v51_v4, %v58_v6  ;;  %p173_p12 = pnand %p172_p11, %p166_p8 }
  0x20   :  { %v54_v9 = vrot.slane %v53_v7, 2  ;;  %v60_v10 = vrot.slane %v59_v8, 2 }
  0x22   :  { %v55_v11 = vmin.f32 %v53_v7, %v54_v9  ;;  %v61_v12 = vmax.f32 %v59_v8, %v60_v10 }
  0x24   :  { %v56_v13 = vrot.slane %v55_v11, 1  ;;  %v62_v14 = vrot.slane %v61_v12, 1 }
  0x26   :  { %v57_v15 = vmin.f32 %v55_v11, %v56_v13  ;;  %v63_v16 = vmax.f32 %v61_v12, %v62_v14 }
  0x28   :  { %67 = vst [vmem:[#allocation5] sm:$0x1] %v57_v15  ;;  %68 = vst [vmem:[#allocation6] sm:$0x1] %v63_v16 }
  0x29   :  { %176 = shalt.err (!%p173_p12)
}
  0x2a   :  { %s177_s3 = scalar_lea.hbm %s280_s1, 16 }
  0x2b   :  { %p178_p13 = scmp.ne.s32.totalorder %s280_s1, %s177_s3  ;;  %p181_p0 = scmp.lt.u32.totalorder %s177_s3, %s280_s1 }
  0x2d   :  { %p183_p1 = pnand %p181_p0, %p178_p13 }
  0x2f   :  { %186 = shalt.err (!%p183_p1)
}
  0x30   :  { %118 = dma.vmem_to_hbm [thread:$0]  %s116_s25, 16, %s280_s1, [#allocation4]  }
  0x31   :  { %s187_s10 = scalar_lea.vmem %s247_s26, 16  ;;  %s191_s11 = scalar_lea.vmem %s247_s26, 32 }
  0x32   :  { %p188_p2 = scmp.ne.s32.totalorder %s247_s26, %s187_s10  ;;  %p192_p3 = scmp.lt.s32.totalorder %s247_s26, %s247_s26 }
  0x33   :  { %p193_p4 = scmp.lt.s32.totalorder %s191_s11, %s187_s10 }
  0x35   :  { %p194_p5 = por %p193_p4, %p192_p3 }
  0x37   :  { %p195_p6 = pnand %p194_p5, %p188_p2 }
  0x39   :  { %198 = shalt.err (!%p195_p6)
}
  0x3a   :  { %s199_s14 = scalar_lea.hbm %s281_s2, 16 }
  0x3b   :  { %p200_p7 = scmp.ne.s32.totalorder %s281_s2, %s199_s14  ;;  %p203_p8 = scmp.lt.u32.totalorder %s199_s14, %s281_s2 }
  0x3d   :  { %p205_p9 = pnand %p203_p8, %p200_p7 }
  0x3f   :  { %208 = shalt.err (!%p205_p9)
}
  0x40   :  { %128 = dma.vmem_to_hbm [thread:$0]  %s247_s26, 16, %s281_s2, [#allocation7]  }
  0x41   :  { %211 = dma.done.wait [#allocation4], 16  }
  0x42   :  { %212 = vsyncadd [#allocation4], 4294967280 }
  0x43   :  { %213 = dma.done.wait [#allocation7], 16  }
  0x44   :  { %214 = vsyncadd [#allocation7], 4294967280 }
  0x45   :  { %135 = vsyncpa [#allocation3], 1 }
  0x46   :  { %136 = vsyncpa [#allocation4], 1 }
  0x47   :  { %137 = vsyncpa [#allocation7], 1 }

</bundles_post_ra>
